<compile_context>
chip_gen: v7x
topology: tpu7x:2x2x1
jax: 0.10.0
libtpu: 0.0.40
codegen_flags: <defaults>
</compile_context>

<pallas_src>
import math

import jax
import jax.numpy as jnp
from jax.experimental import pallas as pl
from jax.experimental.pallas import tpu as pltpu


def _round_up(x: int, m: int) -> int:
    return ((x + m - 1) // m) * m


def _cdiv(a: int, b: int) -> int:
    return -(-a // b)


def _choose_tile_m(n: int, e_pad: int, sublane: int) -> int:
    """Pick the node-tile (row) size.

    - Small N: one tile covering all rows with minimal sublane padding.
    - Otherwise: largest candidate tile that still gives >= 2 grid steps
      (megacore occupancy on v7x) and wastes < 1/8 of the rows on zero
      padding; fall back to the minimum-waste candidate.
    - Small E (HBM-bound regime) allows bigger tiles to amortize per-step
      overhead (~0.35 us) and short DMAs (v6e's 128 MiB VMEM holds them).
    """
    if n <= 256:
        return _round_up(max(n, sublane), sublane)
    candidates = (1024, 512, 256, 128) if e_pad <= 256 else (512, 256, 128)
    for t in candidates:
        tiles = _cdiv(n, t)
        if tiles >= 2 and (tiles * t - n) * 8 <= n:
            return t
    return min(candidates, key=lambda t: (_cdiv(n, t) * t - n, -t))


def _graphconv_kernel(x_ref, w_ref, o_ref):
    # One MXU matmul per grid step: (tile_m, E) @ (E, tile_n), f32 accumulate.
    o_ref[...] = jnp.dot(
        x_ref[...], w_ref[...], preferred_element_type=jnp.float32
    ).astype(o_ref.dtype)


def graph_conv(
    data: jax.Array,
    weight: jax.Array,
    *,
    use_bf16: bool = False,
    out_dtype=None,
) -> jax.Array:
    """Pallas TPU implementation of GraphConv.forward (a plain matmul).

    data:   [N, E] float   (torch.FloatTensor(data) in the reference)
    weight: [E, E] float
    use_bf16: feed the MXU in bf16 (f32 accumulation).  Default False for
              strict parity with the torch.mm f32 reference.
    """
    data = jnp.asarray(data, jnp.float32)
    weight = jnp.asarray(weight, jnp.float32)
    n, e = data.shape
    assert weight.shape == (e, e), "weight must be (emb_size, emb_size)"

    in_dtype = jnp.bfloat16 if use_bf16 else jnp.float32
    if out_dtype is None:
        # On the bf16 path, emit bf16 output (halves store traffic) unless
        # the caller explicitly asks for f32.
        out_dtype = jnp.bfloat16 if use_bf16 else jnp.float32
    bytes_in = jnp.dtype(in_dtype).itemsize
    bytes_out = jnp.dtype(out_dtype).itemsize
    sublane = 16 if use_bf16 else 8

    # ---- Layout / padding ---------------------------------------------------
    # Lane-dense E when e >= 128; for e < 128 keep the true E as a full-dim
    # block (masked stores) instead of 4x-inflating x and 16x-inflating weight
    # with wrapper-side pads (extra HBM round trips).
    e_pad = e if e < 128 else _round_up(e, 128)

    tile_m = _choose_tile_m(n, e_pad, sublane)
    n_pad = _round_up(n, tile_m)

    # Column-tile the weight/output when a resident (E,E) weight block would
    # blow the VMEM budget (critical on v7x: 64 MiB VMEM per TC).  No K-axis
    # accumulator needed — both grid axes stay "parallel".
    if e_pad * e_pad * bytes_in > (16 << 20):
        tile_n = next(t for t in (512, 256, 128) if e_pad % t == 0)
    else:
        tile_n = e_pad
    weight_block_is_constant = tile_n == e_pad

    x = data
    w = weight
    if n_pad != n or e_pad != e:
        x = jnp.pad(x, ((0, n_pad - n), (0, e_pad - e)))
    if e_pad != e:
        w = jnp.pad(w, ((0, e_pad - e), (0, e_pad - e)))
    x = x.astype(in_dtype)
    w = w.astype(in_dtype)

    grid = (n_pad // tile_m, e_pad // tile_n)

    # ---- Explicit VMEM budget ----------------------------------------------
    # double-buffered x tile + double-buffered out tile + weight buffer(s).
    vmem_needed = (
        2 * tile_m * e_pad * bytes_in
        + 2 * tile_m * tile_n * bytes_out
        + (1 if weight_block_is_constant else 2) * e_pad * tile_n * bytes_in
    )
    try:
        vmem_ceiling = int(pltpu.get_tpu_info().vmem_capacity_bytes) * 7 // 8
    except Exception:
        vmem_ceiling = 56 << 20  # safe ceiling for v7x's 64 MiB / TC
    vmem_limit = max(32 << 20, min(vmem_needed * 3 // 2 + (2 << 20), vmem_ceiling))

    cost = pl.CostEstimate(
        flops=2 * n_pad * e_pad * e_pad,
        transcendentals=0,
        bytes_accessed=bytes_in * (n_pad * e_pad + e_pad * e_pad)
        + bytes_out * n_pad * e_pad,
    )

    def build(single_buffer_weight: bool):
        if single_buffer_weight:
            # Constant block index -> a second pipeline buffer is pure waste.
            w_spec = pl.BlockSpec(
                (e_pad, tile_n), lambda i, j: (0, j), pipeline_mode=pl.Buffered(1)
            )
        else:
            w_spec = pl.BlockSpec((e_pad, tile_n), lambda i, j: (0, j))
        return pl.pallas_call(
            _graphconv_kernel,
            out_shape=jax.ShapeDtypeStruct((n_pad, e_pad), out_dtype),
            grid=grid,
            in_specs=[
                # data: one node tile per row-grid step (pipelined HBM->VMEM).
                pl.BlockSpec((tile_m, e_pad), lambda i, j: (i, 0)),
                w_spec,
            ],
            out_specs=pl.BlockSpec((tile_m, tile_n), lambda i, j: (i, j)),
            compiler_params=pltpu.CompilerParams(
                # All tiles independent -> shard across TensorCores on v7x.
                dimension_semantics=("parallel", "parallel"),
                vmem_limit_bytes=vmem_limit,
            ),
            cost_estimate=cost,
        )

    try:
        out_padded = build(weight_block_is_constant)(x, w)
    except Exception:
        # Fallback for jax versions without pl.Buffered single-buffering.
        out_padded = build(False)(x, w)

    if n_pad != n or e_pad != e:
        out_padded = out_padded[:n, :e]
    return out_padded


if __name__ == "__main__":
    emb_size = 32
    num_nodes = 8

    key = jax.random.PRNGKey(0)
    k_data, k_w = jax.random.split(key)

    # Deterministic synthetic parameter init, matching
    #   weight = randn(emb_size, emb_size) / sqrt(emb_size)
    weight = jax.random.normal(
        k_w, (emb_size, emb_size), dtype=jnp.float32
    ) / math.sqrt(emb_size)
    data = jax.random.normal(k_data, (num_nodes, emb_size), dtype=jnp.float32)

    ref = data @ weight

    # f32 path: strict parity with the torch.mm reference.
    out = graph_conv(data, weight)
    jax.block_until_ready(out)
    assert out.shape == (num_nodes, emb_size)
    assert out.dtype == jnp.float32
    assert jnp.allclose(out, ref, atol=1e-5, rtol=1e-5)

    # bf16 MXU path (tolerance check, per perf review).
    out_bf16 = graph_conv(data, weight, use_bf16=True)
    jax.block_until_ready(out_bf16)
    assert jnp.allclose(out_bf16.astype(jnp.float32), ref, atol=1e-1, rtol=5e-2)

    # Odd shapes: exercises multi-tile row grid, row padding, and the
    # e < 128 full-dim (masked-store) path.
    n2, e2 = 300, 96
    d2 = jax.random.normal(jax.random.PRNGKey(1), (n2, e2), dtype=jnp.float32)
    w2 = jax.random.normal(
        jax.random.PRNGKey(2), (e2, e2), dtype=jnp.float32
    ) / math.sqrt(e2)
    out2 = graph_conv(d2, w2)
    jax.block_until_ready(out2)
    assert jnp.allclose(out2, d2 @ w2, atol=1e-4, rtol=1e-4)

    print("KERNEL_OK")
</pallas_src>

<mosaic_0001>
module attributes {stable_mosaic.version = 11 : i64} {
  func.func @_graphconv_kernel(%arg0: i32, %arg1: i32, %arg2: memref<8x32xf32, #tpu.memory_space<vmem>>, %arg3: memref<32x32xf32, #tpu.memory_space<vmem>>, %arg4: memref<8x32xf32, #tpu.memory_space<vmem>>) attributes {dimension_semantics = [#tpu.dimension_semantics<parallel>, #tpu.dimension_semantics<parallel>], iteration_bounds = array<i64: 1, 1>, scalar_prefetch = 0 : i64, scratch_operands = 0 : i64, tpu.core_type = #tpu.core_type<tc>, window_params = [{transform_indices = @transform_0, window_bounds = array<i64: 8, 32>}, {pipeline_mode = #tpu.pipeline_mode<synchronous>, transform_indices = @transform_1, window_bounds = array<i64: 32, 32>}, {transform_indices = @transform_2, window_bounds = array<i64: 8, 32>}]} {
    %c0 = arith.constant 0 : index
    %c0_0 = arith.constant 0 : index
    %0 = vector.load %arg2[%c0, %c0_0] : memref<8x32xf32, #tpu.memory_space<vmem>>, vector<8x32xf32>
    %c0_1 = arith.constant 0 : index
    %c0_2 = arith.constant 0 : index
    %1 = vector.load %arg3[%c0_1, %c0_2] : memref<32x32xf32, #tpu.memory_space<vmem>>, vector<32x32xf32>
    %cst = arith.constant dense<0.000000e+00> : vector<8x32xf32>
    %2 = tpu.matmul %0, %1, %cst {dimension_numbers = #tpu.dot_dimension_numbers<[1], [0], [0], [1], [0, 0, 1, 1], [], []>} : vector<8x32xf32>, vector<32x32xf32>, vector<8x32xf32> -> vector<8x32xf32>
    %c0_3 = arith.constant 0 : index
    %c0_4 = arith.constant 0 : index
    %3 = vector.load %arg4[%c0_3, %c0_4] : memref<8x32xf32, #tpu.memory_space<vmem>>, vector<8x32xf32>
    tpu.vector_store %arg4[%c0_3, %c0_4], %2 {strides = array<i32>} : memref<8x32xf32, #tpu.memory_space<vmem>>, vector<8x32xf32>,
    return
  }
  func.func @transform_0(%arg0: i32, %arg1: i32) -> (i32, i32) {
    %c0_i32 = arith.constant 0 : i32
    %c0_i32_0 = arith.constant 0 : i32
    return %arg0, %c0_i32 : i32, i32
  }
  func.func @transform_1(%arg0: i32, %arg1: i32) -> (i32, i32) {
    %c0_i32 = arith.constant 0 : i32
    %c0_i32_0 = arith.constant 0 : i32
    return %c0_i32, %arg1 : i32, i32
  }
  func.func @transform_2(%arg0: i32, %arg1: i32) -> (i32, i32) {
    %c0_i32 = arith.constant 0 : i32
    return %arg0, %arg1 : i32, i32
  }
}

module attributes {stable_mosaic.version = 11 : i64} {
  func.func @_graphconv_kernel(%arg0: i32, %arg1: i32, %arg2: memref<8x32xf32, #tpu.memory_space<vmem>>, %arg3: memref<32x32xf32, #tpu.memory_space<vmem>>, %arg4: memref<8x32xf32, #tpu.memory_space<vmem>>) attributes {dimension_semantics = [#tpu.dimension_semantics<parallel>, #tpu.dimension_semantics<parallel>], iteration_bounds = array<i64: 1, 1>, scalar_prefetch = 0 : i64, scratch_operands = 0 : i64, tpu.core_type = #tpu.core_type<tc>, window_params = [{transform_indices = @transform_0, window_bounds = array<i64: 8, 32>}, {transform_indices = @transform_1, window_bounds = array<i64: 32, 32>}, {transform_indices = @transform_2, window_bounds = array<i64: 8, 32>}]} {
    %c0 = arith.constant 0 : index
    %c0_0 = arith.constant 0 : index
    %0 = vector.load %arg2[%c0, %c0_0] : memref<8x32xf32, #tpu.memory_space<vmem>>, vector<8x32xf32>
    %c0_1 = arith.constant 0 : index
    %c0_2 = arith.constant 0 : index
    %1 = vector.load %arg3[%c0_1, %c0_2] : memref<32x32xf32, #tpu.memory_space<vmem>>, vector<32x32xf32>
    %cst = arith.constant dense<0.000000e+00> : vector<8x32xf32>
    %2 = tpu.matmul %0, %1, %cst {dimension_numbers = #tpu.dot_dimension_numbers<[1], [0], [0], [1], [0, 0, 1, 1], [], []>} : vector<8x32xf32>, vector<32x32xf32>, vector<8x32xf32> -> vector<8x32xf32>
    %c0_3 = arith.constant 0 : index
    %c0_4 = arith.constant 0 : index
    %3 = vector.load %arg4[%c0_3, %c0_4] : memref<8x32xf32, #tpu.memory_space<vmem>>, vector<8x32xf32>
    tpu.vector_store %arg4[%c0_3, %c0_4], %2 {strides = array<i32>} : memref<8x32xf32, #tpu.memory_space<vmem>>, vector<8x32xf32>,
    return
  }
  func.func @transform_0(%arg0: i32, %arg1: i32) -> (i32, i32) {
    %c0_i32 = arith.constant 0 : i32
    %c0_i32_0 = arith.constant 0 : i32
    return %arg0, %c0_i32 : i32, i32
  }
  func.func @transform_1(%arg0: i32, %arg1: i32) -> (i32, i32) {
    %c0_i32 = arith.constant 0 : i32
    %c0_i32_0 = arith.constant 0 : i32
    return %c0_i32, %arg1 : i32, i32
  }
  func.func @transform_2(%arg0: i32, %arg1: i32) -> (i32, i32) {
    %c0_i32 = arith.constant 0 : i32
    return %arg0, %arg1 : i32, i32
  }
}

</mosaic_0001>

<bundles_post_ra>
// kernel: tpu_custom_call.1
= control target key start
LH: loop header
LB: loop body
LE: loop exit
PB: predicated region body
PF: predicated region fallthrough
CT: control target
= control target key end

     0   :  { %7 = vsyncpa [#allocation3], 0  ;;  %s303_s0 = inlined_call_operand.hbm [shape: f32[8,32], index: 0, kind: input, shape index: {}]   ;;  %s304_s1 = inlined_call_operand.hbm [shape: f32[32,32], index: 1, kind: input, shape index: {}]   ;;  %s305_s2 = inlined_call_operand.hbm [shape: f32[8,32], index: 2, kind: output, shape index: {}]  }
   0x1   :  { %8 = vsyncpa [#allocation6], 0 }
   0x2   :  { %9 = vsyncpa [#allocation4], 0  ;;  %s237_s9 = smov [#allocation2]   ;;  %s238_s11 = smov [#allocation5]  }
   0x3   :  { %s16_s10 = sshll.u32 %s237_s9, 4  ;;  %s25_s12 = sshll.u32 %s238_s11, 4  ;;  %s17_s10 = int_to_ptr.vmem [resolvable:$true] %s16_s10  ;;  %s260_s12 = int_to_ptr.vmem [resolvable:$true] %s25_s12 }
   0x4   :  { %s165_s15 = scalar_lea.hbm %s303_s0, 128 }
   0x5   :  { %p166_p0 = scmp.ne.s32.totalorder %s303_s0, %s165_s15  ;;  %p169_p1 = scmp.lt.u32.totalorder %s165_s15, %s303_s0 }
   0x7   :  { %p171_p2 = pnand %p169_p1, %p166_p0 }
   0x9   :  { %174 = shalt.err (!%p171_p2)
}
   0xa   :  { %s175_s20 = scalar_lea.vmem %s17_s10, 128  ;;  %p180_p4 = scmp.lt.s32.totalorder %s17_s10, %s17_s10 }
   0xb   :  { %p176_p3 = scmp.ne.s32.totalorder %s17_s10, %s175_s20  ;;  %p181_p5 = scmp.lt.s32.totalorder %s175_s20, %s175_s20 }
   0xd   :  { %p182_p6 = por %p181_p5, %p180_p4 }
   0xf   :  { %p183_p7 = pnand %p182_p6, %p176_p3 }
  0x11   :  { %186 = shalt.err (!%p183_p7)
}
  0x12   :  { %19 = dma.hbm_to_vmem [thread:$0]  %s303_s0, 128, %s17_s10, [#allocation3]  }
  0x13   :  { %s187_s25 = scalar_lea.hbm %s304_s1, 512 }
  0x14   :  { %p188_p8 = scmp.ne.s32.totalorder %s304_s1, %s187_s25  ;;  %p191_p9 = scmp.lt.u32.totalorder %s187_s25, %s304_s1 }
  0x16   :  { %p193_p10 = pnand %p191_p9, %p188_p8 }
  0x18   :  { %196 = shalt.err (!%p193_p10)
}
  0x19   :  { %s197_s30 = scalar_lea.vmem %s260_s12, 512  ;;  %p202_p12 = scmp.lt.s32.totalorder %s260_s12, %s260_s12 }
  0x1a   :  { %p198_p11 = scmp.ne.s32.totalorder %s260_s12, %s197_s30  ;;  %p203_p13 = scmp.lt.s32.totalorder %s197_s30, %s197_s30 }
  0x1c   :  { %p204_p0 = por %p203_p13, %p202_p12 }
  0x1e   :  { %p205_p1 = pnand %p204_p0, %p198_p11 }
  0x20   :  { %208 = shalt.err (!%p205_p1)
}
  0x21   :  { %s239_s0 = smov 128   ;;  %s240_s3 = smov 8  }
  0x22   :  { %31 = dma.hbm_to_vmem [thread:$0]  %s304_s1, 512, %s260_s12, [#allocation6], %s239_s0, %s239_s0, %s240_s3  }
  0x23   :  { %231 = dma.done.wait [#allocation3], 128  }
  0x24   :  { %232 = vsyncadd [#allocation3], 4294967168 }
  0x25   :  { %233 = dma.done.wait [#allocation6], 512  }
  0x26   :  { %234 = vsyncadd [#allocation6], 4294966784  ;;  %v241_v0 = vmov 0.0|0.0   ;;  %vm242_vm0 = vmmov 0   ;;  %v243_v1 = vmov 0.0   ;;  %v39_v2 = vld [vmem:[#allocation5] sm:$0xff] }
  0x27   :  { %151 = vmatprep.subr.bf16.mxu0 %v241_v0  ;;  %148 = vmatprep.mubr.msk.f32.mxu0 %vm242_vm0, %v243_v1  ;;  %v40_v3 = vld [vmem:[#allocation5 + $0x8] sm:$0xff]  ;;  %v41_v4 = vld [vmem:[#allocation5 + $0x10] sm:$0xff]  ;;  %v42_v6 = vld [vmem:[#allocation5 + $0x18] sm:$0xff]  ;;  %vm43_vm1 = vcmask 261120   ;;  %s244_s1 = smov [#allocation7]  }
  0x28   :  { %v152_v5 = vpack.c.bf16 %v40_v3, %v39_v2  ;;  %v155_v7 = vpack.c.bf16 %v42_v6, %v41_v4  ;;  %v38_v8 = vld [vmem:[#allocation2] sm:$0xff]  ;;  %s124_s6 = sshll.u32 %s244_s1, 4  ;;  %s125_s6 = int_to_ptr.vmem [resolvable:$true] %s124_s6 }
  0x29   :  { %s209_s7 = scalar_lea.vmem %s125_s6, 128  ;;  %p214_p3 = scmp.lt.s32.totalorder %s125_s6, %s125_s6 }
  0x2a   :  { %153 = vmatpush3.bf16.msra.mxu0 %v152_v5  ;;  %p210_p2 = scmp.ne.s32.totalorder %s125_s6, %s209_s7  ;;  %p215_p4 = scmp.lt.s32.totalorder %s209_s7, %s209_s7 }
  0x2b   :  { %154 = vmatprep.subr.bf16.mxu0 %v241_v0 }
  0x2c   :  { %p216_p5 = por %p215_p4, %p214_p3 }
  0x2e   :  { %156 = vmatpush3.bf16.msra.mxu0 %v155_v7  ;;  %p217_p6 = pnand %p216_p5, %p210_p2 }
  0x31   :  { %149 = vmatmul.mubr.msk.f32.vlgmr.msra.gmra.mrb[0].mxu0 %vm43_vm1, %v38_v8 }
 0x104   :  { %v113_v9 = vpop.f32.mrb[0].mxu0 }
 0x105   :  { %117 = vst.msk [vmem:[#allocation7] sm:$0xff] %vm43_vm1, %v113_v9  ;;  %v150_v10 = vpop.f32.mrb[1].mxu0 }
 0x106   :  { %220 = shalt.err (!%p217_p6)
}
 0x107   :  { %s221_s10 = scalar_lea.hbm %s305_s2, 128 }
 0x108   :  { %p222_p7 = scmp.ne.s32.totalorder %s305_s2, %s221_s10  ;;  %p225_p8 = scmp.lt.u32.totalorder %s221_s10, %s305_s2 }
 0x10a   :  { %p227_p9 = pnand %p225_p8, %p222_p7 }
 0x10c   :  { %230 = shalt.err (!%p227_p9)
}
 0x10d   :  { %127 = dma.vmem_to_hbm [thread:$0]  %s125_s6, 128, %s305_s2, [#allocation4]  }
 0x10e   :  { %235 = dma.done.wait [#allocation4], 128  }
 0x10f   :  { %236 = vsyncadd [#allocation4], 4294967168 }
 0x110   :  { %131 = vsyncpa [#allocation3], 1 }
 0x111   :  { %132 = vsyncpa [#allocation6], 1 }
 0x112   :  { %133 = vsyncpa [#allocation4], 1 }

// kernel: tpu_custom_call.1
= control target key start
LH: loop header
LB: loop body
LE: loop exit
PB: predicated region body
PF: predicated region fallthrough
CT: control target
= control target key end

     0   :  { %7 = vsyncpa [#allocation3], 0  ;;  %s303_s0 = inlined_call_operand.hbm [shape: f32[8,32], index: 0, kind: input, shape index: {}]   ;;  %s304_s1 = inlined_call_operand.hbm [shape: f32[32,32], index: 1, kind: input, shape index: {}]   ;;  %s305_s2 = inlined_call_operand.hbm [shape: f32[8,32], index: 2, kind: output, shape index: {}]  }
   0x1   :  { %8 = vsyncpa [#allocation6], 0 }
   0x2   :  { %9 = vsyncpa [#allocation4], 0  ;;  %s237_s9 = smov [#allocation2]   ;;  %s238_s11 = smov [#allocation5]  }
   0x3   :  { %s16_s10 = sshll.u32 %s237_s9, 4  ;;  %s25_s12 = sshll.u32 %s238_s11, 4  ;;  %s17_s10 = int_to_ptr.vmem [resolvable:$true] %s16_s10  ;;  %s260_s12 = int_to_ptr.vmem [resolvable:$true] %s25_s12 }
   0x4   :  { %s165_s15 = scalar_lea.hbm %s303_s0, 128 }
   0x5   :  { %p166_p0 = scmp.ne.s32.totalorder %s303_s0, %s165_s15  ;;  %p169_p1 = scmp.lt.u32.totalorder %s165_s15, %s303_s0 }
   0x7   :  { %p171_p2 = pnand %p169_p1, %p166_p0 }
   0x9   :  { %174 = shalt.err (!%p171_p2)
}
   0xa   :  { %s175_s20 = scalar_lea.vmem %s17_s10, 128  ;;  %p180_p4 = scmp.lt.s32.totalorder %s17_s10, %s17_s10 }
   0xb   :  { %p176_p3 = scmp.ne.s32.totalorder %s17_s10, %s175_s20  ;;  %p181_p5 = scmp.lt.s32.totalorder %s175_s20, %s175_s20 }
   0xd   :  { %p182_p6 = por %p181_p5, %p180_p4 }
   0xf   :  { %p183_p7 = pnand %p182_p6, %p176_p3 }
  0x11   :  { %186 = shalt.err (!%p183_p7)
}
  0x12   :  { %19 = dma.hbm_to_vmem [thread:$0]  %s303_s0, 128, %s17_s10, [#allocation3]  }
  0x13   :  { %s187_s25 = scalar_lea.hbm %s304_s1, 512 }
  0x14   :  { %p188_p8 = scmp.ne.s32.totalorder %s304_s1, %s187_s25  ;;  %p191_p9 = scmp.lt.u32.totalorder %s187_s25, %s304_s1 }
  0x16   :  { %p193_p10 = pnand %p191_p9, %p188_p8 }
  0x18   :  { %196 = shalt.err (!%p193_p10)
}
  0x19   :  { %s197_s30 = scalar_lea.vmem %s260_s12, 512  ;;  %p202_p12 = scmp.lt.s32.totalorder %s260_s12, %s260_s12 }
  0x1a   :  { %p198_p11 = scmp.ne.s32.totalorder %s260_s12, %s197_s30  ;;  %p203_p13 = scmp.lt.s32.totalorder %s197_s30, %s197_s30 }
  0x1c   :  { %p204_p0 = por %p203_p13, %p202_p12 }
  0x1e   :  { %p205_p1 = pnand %p204_p0, %p198_p11 }
  0x20   :  { %208 = shalt.err (!%p205_p1)
}
  0x21   :  { %s239_s0 = smov 128   ;;  %s240_s3 = smov 8  }
  0x22   :  { %31 = dma.hbm_to_vmem [thread:$0]  %s304_s1, 512, %s260_s12, [#allocation6], %s239_s0, %s239_s0, %s240_s3  }
  0x23   :  { %231 = dma.done.wait [#allocation3], 128  }
  0x24   :  { %232 = vsyncadd [#allocation3], 4294967168 }
  0x25   :  { %233 = dma.done.wait [#allocation6], 512  }
  0x26   :  { %234 = vsyncadd [#allocation6], 4294966784  ;;  %v241_v0 = vmov 0.0|0.0   ;;  %vm242_vm0 = vmmov 0   ;;  %v243_v1 = vmov 0.0   ;;  %v39_v2 = vld [vmem:[#allocation5] sm:$0xff] }
  0x27   :  { %151 = vmatprep.subr.bf16.mxu0 %v241_v0  ;;  %148 = vmatprep.mubr.msk.f32.mxu0 %vm242_vm0, %v243_v1  ;;  %v40_v3 = vld [vmem:[#allocation5 + $0x8] sm:$0xff]  ;;  %v41_v4 = vld [vmem:[#allocation5 + $0x10] sm:$0xff]  ;;  %v42_v6 = vld [vmem:[#allocation5 + $0x18] sm:$0xff]  ;;  %vm43_vm1 = vcmask 261120   ;;  %s244_s1 = smov [#allocation7]  }
  0x28   :  { %v152_v5 = vpack.c.bf16 %v40_v3, %v39_v2  ;;  %v155_v7 = vpack.c.bf16 %v42_v6, %v41_v4  ;;  %v38_v8 = vld [vmem:[#allocation2] sm:$0xff]  ;;  %s124_s6 = sshll.u32 %s244_s1, 4  ;;  %s125_s6 = int_to_ptr.vmem [resolvable:$true] %s124_s6 }
  0x29   :  { %s209_s7 = scalar_lea.vmem %s125_s6, 128  ;;  %p214_p3 = scmp.lt.s32.totalorder %s125_s6, %s125_s6 }
  0x2a   :  { %153 = vmatpush3.bf16.msra.mxu0 %v152_v5  ;;  %p210_p2 = scmp.ne.s32.totalorder %s125_s6, %s209_s7  ;;  %p215_p4 = scmp.lt.s32.totalorder %s209_s7, %s209_s7 }
  0x2b   :  { %154 = vmatprep.subr.bf16.mxu0 %v241_v0 }
  0x2c   :  { %p216_p5 = por %p215_p4, %p214_p3 }
  0x2e   :  { %156 = vmatpush3.bf16.msra.mxu0 %v155_v7  ;;  %p217_p6 = pnand %p216_p5, %p210_p2 }
  0x31   :  { %149 = vmatmul.mubr.msk.f32.vlgmr.msra.gmra.mrb[0].mxu0 %vm43_vm1, %v38_v8 }
 0x104   :  { %v113_v9 = vpop.f32.mrb[0].mxu0 }
 0x105   :  { %117 = vst.msk [vmem:[#allocation7] sm:$0xff] %vm43_vm1, %v113_v9  ;;  %v150_v10 = vpop.f32.mrb[1].mxu0 }
 0x106   :  { %220 = shalt.err (!%p217_p6)
}
 0x107   :  { %s221_s10 = scalar_lea.hbm %s305_s2, 128 }
 0x108   :  { %p222_p7 = scmp.ne.s32.totalorder %s305_s2, %s221_s10  ;;  %p225_p8 = scmp.lt.u32.totalorder %s221_s10, %s305_s2 }
 0x10a   :  { %p227_p9 = pnand %p225_p8, %p222_p7 }
 0x10c   :  { %230 = shalt.err (!%p227_p9)
}
 0x10d   :  { %127 = dma.vmem_to_hbm [thread:$0]  %s125_s6, 128, %s305_s2, [#allocation4]  }
 0x10e   :  { %235 = dma.done.wait [#allocation4], 128  }
 0x10f   :  { %236 = vsyncadd [#allocation4], 4294967168 }
 0x110   :  { %131 = vsyncpa [#allocation3], 1 }
 0x111   :  { %132 = vsyncpa [#allocation6], 1 }
 0x112   :  { %133 = vsyncpa [#allocation4], 1 }

</bundles_post_ra>
